<compile_context>
chip_gen: v6e
topology: v6e:2x2x1
jax: 0.10.0
libtpu: 0.0.40
codegen_flags: <defaults>
</compile_context>

<pallas_src>
import functools

import jax
import jax.numpy as jnp
from jax.experimental import pallas as pl
from jax.experimental.pallas import tpu as pltpu


def _celltype_poisson_kernel(bias, valid_rows, pred_ref, tgt_ref, w_ref, acc_ref):
    """One (batch, time-block) tile of weighted Poisson NLL.

    pred_ref/tgt_ref: (tt, N), w_ref: (1, N), acc_ref: (8, N) resident
    per-batch accumulator across the time grid axis.
    `valid_rows` is None when the tile divides T_out, else the true T_out
    (the ragged tail is masked to zero).
    """
    t = pl.program_id(1)

    @pl.when(t == 0)
    def _():
        acc_ref[...] = jnp.zeros_like(acc_ref)

    o = pred_ref[...].astype(jnp.float32)        # (tt, N)
    tg = tgt_ref[...].astype(jnp.float32)        # (tt, N)
    w = w_ref[...].astype(jnp.float32)           # (1, N) -> broadcast over time

    loss = (o - tg * jnp.log(o + bias)) * w      # (tt, N)

    tt, n = loss.shape
    if valid_rows is not None:                   # static trace-time branch
        # Ragged final tile: rows past the true extent may hold garbage
        # (including NaN after the log) -> select, don't multiply.
        row = jax.lax.broadcasted_iota(jnp.int32, (tt, 1), 0) + t * tt
        loss = jnp.where(row < valid_rows, loss, 0.0)

    if tt % 8 == 0:
        # Fold groups of 8 time rows on top of each other: pure VALU vreg adds,
        # no cross-sublane (XLU) reduce in the hot loop.
        acc_ref[...] += loss.reshape(tt // 8, 8, n).sum(axis=0)
    else:
        # Tiny / odd tiles only (tt == T_out < 8 or non-multiple-of-8 extent):
        # one small XLU reduce, scattered into sublane 0 of the accumulator.
        tile_sum = jnp.sum(loss, axis=0, keepdims=True)              # (1, N)
        row0 = jax.lax.broadcasted_iota(jnp.int32, (8, 1), 0) == 0   # (8, 1)
        acc_ref[...] += jnp.where(row0, tile_sum, 0.0)


def _pick_time_tile(T_out, N, B, lag, time_block):
    """Largest legal time tile under a VMEM budget, via a simple cost model."""
    lane = ((max(N, 1) + 127) // 128) * 128
    bytes_per_row = lane * 4
    # 2 streaming inputs x 2 pipeline buffers must fit in ~24 MiB.
    vmem_rows = max(8, (24 * 1024 * 1024) // (4 * bytes_per_row))
    cap = max(1, min(time_block, vmem_rows, T_out))

    cands = set()
    if T_out <= cap:
        cands.add(T_out)                      # full extent: always layout-legal
    for d in range(8, cap + 1, 8):
        if T_out % d == 0:
            cands.add(d)                      # sublane-aligned exact divisor
    ragged = (cap // 8) * 8
    if 8 <= ragged < T_out:
        cands.add(ragged)                     # ragged tail handled by in-kernel mask
    if not cands:
        cands.add(max(1, min(T_out, cap)))

    base_bytes = 2 * B * T_out * N * 4        # read output + (lagged) target once

    def est(d):
        steps = B * (-(-T_out // d))
        extra = 0 if lag % d == 0 else 2 * B * T_out * N * 4   # materialized slice
        return steps * 0.4e-6 + (base_bytes + extra) / 1.0e12

    # minimize estimated cost; tie-break: exact divisor first, then larger tile
    return min(cands, key=lambda d: (est(d), T_out % d != 0, -d))


def celltype_poisson_loss_3d(output, target, group_assignment, group_counts,
                             *, bias=1e-16, per_neuron=False, avg=False,
                             time_block=512):
    """Pallas implementation of CelltypePoissonLoss3d.forward."""
    B, T_out, N = output.shape
    T = target.shape[1]
    lag = T - T_out

    # --- class-balancing weight (tiny gather; plain JAX glue) ----------------
    gc = group_counts.astype(jnp.float32)
    weight = (gc.sum() / gc.shape[0]) / gc[group_assignment - 1]      # (B, N)
    weight = weight.reshape(B, 1, N).astype(jnp.float32)

    # --- time tiling ----------------------------------------------------------
    tt = _pick_time_tile(T_out, N, B, lag, max(8, int(time_block)))
    needs_mask = (T_out % tt) != 0
    n_tblocks = -(-T_out // tt)

    # --- fold the lag slice into the target index_map when tile-aligned ------
    if lag % tt == 0:
        tgt_in, lag_blocks = target, lag // tt
    else:
        # TODO(synk): non-tile-aligned lag falls back to a materialized slice
        # (one extra HBM read+write pass over target); a manual-DMA gather
        # with an element offset would remove it.
        tgt_in, lag_blocks = target[:, lag:, :], 0

    grid = (B, n_tblocks)

    kernel = functools.partial(_celltype_poisson_kernel, float(bias),
                               int(T_out) if needs_mask else None)

    cost = pl.CostEstimate(
        flops=5 * B * T_out * N,
        transcendentals=B * T_out * N,
        bytes_accessed=(2 * B * T_out * N + B * N + B * 8 * N) * 4,
    )

    acc = pl.pallas_call(
        kernel,
        out_shape=jax.ShapeDtypeStruct((B, 8, N), jnp.float32),
        grid_spec=pltpu.PrefetchScalarGridSpec(
            num_scalar_prefetch=0,
            grid=grid,
            in_specs=[
                # squeezed batch dim -> kernel sees (tt, N) / (1, N)
                pl.BlockSpec((None, tt, N), lambda b, t: (b, t, 0)),
                pl.BlockSpec((None, tt, N),
                             lambda b, t: (b, t + lag_blocks, 0)),
                pl.BlockSpec((None, 1, N), lambda b, t: (b, 0, 0)),
            ],
            out_specs=pl.BlockSpec((None, 8, N), lambda b, t: (b, 0, 0)),
        ),
        compiler_params=pltpu.CompilerParams(
            dimension_semantics=("parallel", "arbitrary"),
            vmem_limit_bytes=48 * 1024 * 1024,
        ),
        cost_estimate=cost,
    )(output, tgt_in, weight)

    # Epilogue: 8->1 sublane reduce + batch reduce (tiny, plain JAX).
    per_neuron_sum = jnp.sum(acc, axis=(0, 1))                # (N,)
    if per_neuron:
        return per_neuron_sum / (B * T_out)                   # loss.view(-1,N).mean(0)
    total = jnp.sum(per_neuron_sum)
    if avg:
        return total / (B * T_out * N)                        # loss.mean()
    return total                                              # loss.sum()


def _reference(output, target, group_assignment, group_counts,
               bias=1e-16, per_neuron=False, avg=False):
    """Pure-JAX transcription of the PyTorch forward (for verification)."""
    lag = target.shape[1] - output.shape[1]
    gc = group_counts.astype(jnp.float32)
    loss = output - target[:, lag:, :] * jnp.log(output + bias)
    w = (gc.sum() / gc.shape[0] / gc[group_assignment - 1])[:, None, :]
    loss = loss * w
    if not per_neuron:
        return loss.mean() if avg else loss.sum()
    return loss.reshape(-1, loss.shape[-1]).mean(axis=0)


def _make_inputs(key, B, T, T_out, N, G):
    k_out, k_tgt, k_grp = jax.random.split(key, 3)
    output = jnp.exp(0.3 * jax.random.normal(k_out, (B, T_out, N), jnp.float32))
    target = jnp.abs(jax.random.normal(k_tgt, (B, T, N), jnp.float32)) * 2.0
    labels = jax.random.randint(k_grp, (N,), 1, G + 1, dtype=jnp.int32)   # (N,)
    group_assignment = jnp.tile(labels[None, :], (B, 1))                  # (B, N)
    group_counts = jnp.bincount(labels - 1, length=G).astype(jnp.int32)   # (G,)
    return output, target, group_assignment, group_counts


if __name__ == "__main__":
    key = jax.random.PRNGKey(0)
    k1, k2, k3 = jax.random.split(key, 3)

    # --- case 1: tile-aligned lag, all three reduction modes ------------------
    out, tgt, ga, gc = _make_inputs(k1, B=2, T=32, T_out=16, N=16, G=3)  # lag=16

    got = jax.block_until_ready(celltype_poisson_loss_3d(out, tgt, ga, gc))
    want = _reference(out, tgt, ga, gc)
    assert jnp.allclose(got, want, rtol=1e-5, atol=1e-5), (got, want)

    got_pn = jax.block_until_ready(
        celltype_poisson_loss_3d(out, tgt, ga, gc, per_neuron=True))
    want_pn = _reference(out, tgt, ga, gc, per_neuron=True)
    assert jnp.allclose(got_pn, want_pn, rtol=1e-5, atol=1e-5)

    got_avg = jax.block_until_ready(
        celltype_poisson_loss_3d(out, tgt, ga, gc, avg=True))
    want_avg = _reference(out, tgt, ga, gc, avg=True)
    assert jnp.allclose(got_avg, want_avg, rtol=1e-5, atol=1e-5)

    # --- case 2: lag not tile-aligned (materialized-slice fallback) -----------
    out, tgt, ga, gc = _make_inputs(k2, B=2, T=21, T_out=16, N=10, G=3)  # lag=5
    got = jax.block_until_ready(celltype_poisson_loss_3d(out, tgt, ga, gc))
    want = _reference(out, tgt, ga, gc)
    assert jnp.allclose(got, want, rtol=1e-5, atol=1e-5), (got, want)

    # --- case 3: ragged time tiles (in-kernel tail mask) -----------------------
    out, tgt, ga, gc = _make_inputs(k3, B=2, T=24, T_out=20, N=12, G=3)  # lag=4
    got = jax.block_until_ready(
        celltype_poisson_loss_3d(out, tgt, ga, gc, time_block=8))
    want = _reference(out, tgt, ga, gc)
    assert jnp.allclose(got, want, rtol=1e-5, atol=1e-5), (got, want)

    print("KERNEL_OK")
</pallas_src>

<mosaic_0001>
module attributes {stable_mosaic.version = 11 : i64} {
  func.func @_celltype_poisson_kernel(%arg0: i32, %arg1: i32, %arg2: memref<1x16x16xf32, #tpu.memory_space<vmem>>, %arg3: memref<1x16x16xf32, #tpu.memory_space<vmem>>, %arg4: memref<1x1x16xf32, #tpu.memory_space<vmem>>, %arg5: memref<1x8x16xf32, #tpu.memory_space<vmem>>) attributes {dimension_semantics = [#tpu.dimension_semantics<parallel>, #tpu.dimension_semantics<arbitrary>], iteration_bounds = array<i64: 2, 1>, scalar_prefetch = 0 : i64, scratch_operands = 0 : i64, tpu.core_type = #tpu.core_type<tc>, window_params = [{transform_indices = @transform_0, window_bounds = array<i64: 1, 16, 16>}, {transform_indices = @transform_1, window_bounds = array<i64: 1, 16, 16>}, {transform_indices = @transform_2, window_bounds = array<i64: 1, 1, 16>}, {transform_indices = @transform_3, window_bounds = array<i64: 1, 8, 16>}]} {
    %c0_i32 = arith.constant 0 : i32
    %0 = arith.cmpi eq, %arg1, %c0_i32 : i32
    %1 = arith.extui %0 : i1 to i32
    %c0_i32_0 = arith.constant 0 : i32
    %2 = arith.cmpi ne, %1, %c0_i32_0 : i32
    scf.if %2 {
      %cst_16 = arith.constant 0.000000e+00 : f32
      %24 = vector.broadcast %cst_16 : f32 to vector<8x16xf32>
      %c0_17 = arith.constant 0 : index
      %c0_18 = arith.constant 0 : index
      %c0_19 = arith.constant 0 : index
      %25 = vector.load %arg5[%c0_17, %c0_18, %c0_19] : memref<1x8x16xf32, #tpu.memory_space<vmem>>, vector<1x8x16xf32>
      %26 = vector.shape_cast %25 : vector<1x8x16xf32> to vector<8x16xf32>
      %27 = vector.shape_cast %24 : vector<8x16xf32> to vector<1x8x16xf32>
      tpu.vector_store %arg5[%c0_17, %c0_18, %c0_19], %27 {strides = array<i32>} : memref<1x8x16xf32, #tpu.memory_space<vmem>>, vector<1x8x16xf32>,
    } else {
    }
    %c0 = arith.constant 0 : index
    %c0_1 = arith.constant 0 : index
    %c0_2 = arith.constant 0 : index
    %3 = vector.load %arg2[%c0, %c0_1, %c0_2] : memref<1x16x16xf32, #tpu.memory_space<vmem>>, vector<1x16x16xf32>
    %4 = vector.shape_cast %3 : vector<1x16x16xf32> to vector<16x16xf32>
    %c0_3 = arith.constant 0 : index
    %c0_4 = arith.constant 0 : index
    %c0_5 = arith.constant 0 : index
    %5 = vector.load %arg3[%c0_3, %c0_4, %c0_5] : memref<1x16x16xf32, #tpu.memory_space<vmem>>, vector<1x16x16xf32>
    %6 = vector.shape_cast %5 : vector<1x16x16xf32> to vector<16x16xf32>
    %c0_6 = arith.constant 0 : index
    %c0_7 = arith.constant 0 : index
    %c0_8 = arith.constant 0 : index
    %7 = vector.load %arg4[%c0_6, %c0_7, %c0_8] : memref<1x1x16xf32, #tpu.memory_space<vmem>>, vector<1x1x16xf32>
    %8 = vector.shape_cast %7 : vector<1x1x16xf32> to vector<1x16xf32>
    %cst = arith.constant 1.000000e-16 : f32
    %9 = vector.broadcast %cst : f32 to vector<16x16xf32>
    %10 = arith.addf %4, %9 : vector<16x16xf32>
    %11 = math.log %10 : vector<16x16xf32>
    %12 = arith.mulf %6, %11 : vector<16x16xf32>
    %13 = arith.subf %4, %12 : vector<16x16xf32>
    %14 = vector.broadcast %8 : vector<1x16xf32> to vector<16x16xf32>
    %15 = arith.mulf %13, %14 : vector<16x16xf32>
    %c0_9 = arith.constant 0 : index
    %c0_10 = arith.constant 0 : index
    %c0_11 = arith.constant 0 : index
    %16 = vector.load %arg5[%c0_9, %c0_10, %c0_11] : memref<1x8x16xf32, #tpu.memory_space<vmem>>, vector<1x8x16xf32>
    %17 = vector.shape_cast %16 : vector<1x8x16xf32> to vector<8x16xf32>
    %18 = vector.shape_cast %15 : vector<16x16xf32> to vector<2x8x16xf32>
    %cst_12 = arith.constant dense<0.000000e+00> : vector<8x16xf32>
    %19 = vector.multi_reduction <add>, %18, %cst_12 [0] : vector<2x8x16xf32> to vector<8x16xf32>
    %20 = arith.addf %17, %19 : vector<8x16xf32>
    %c0_13 = arith.constant 0 : index
    %c0_14 = arith.constant 0 : index
    %c0_15 = arith.constant 0 : index
    %21 = vector.load %arg5[%c0_13, %c0_14, %c0_15] : memref<1x8x16xf32, #tpu.memory_space<vmem>>, vector<1x8x16xf32>
    %22 = vector.shape_cast %21 : vector<1x8x16xf32> to vector<8x16xf32>
    %23 = vector.shape_cast %20 : vector<8x16xf32> to vector<1x8x16xf32>
    tpu.vector_store %arg5[%c0_13, %c0_14, %c0_15], %23 {strides = array<i32>} : memref<1x8x16xf32, #tpu.memory_space<vmem>>, vector<1x8x16xf32>,
    return
  }
  func.func @transform_0(%arg0: i32, %arg1: i32) -> (i32, i32, i32) {
    %c0_i32 = arith.constant 0 : i32
    %c0_i32_0 = arith.constant 0 : i32
    return %arg0, %arg1, %c0_i32 : i32, i32, i32
  }
  func.func @transform_1(%arg0: i32, %arg1: i32) -> (i32, i32, i32) {
    %c1_i32 = arith.constant 1 : i32
    %0 = arith.addi %arg1, %c1_i32 : i32
    %c0_i32 = arith.constant 0 : i32
    %c0_i32_0 = arith.constant 0 : i32
    return %arg0, %0, %c0_i32 : i32, i32, i32
  }
  func.func @transform_2(%arg0: i32, %arg1: i32) -> (i32, i32, i32) {
    %c0_i32 = arith.constant 0 : i32
    %c0_i32_0 = arith.constant 0 : i32
    %c0_i32_1 = arith.constant 0 : i32
    return %arg0, %c0_i32, %c0_i32_0 : i32, i32, i32
  }
  func.func @transform_3(%arg0: i32, %arg1: i32) -> (i32, i32, i32) {
    %c0_i32 = arith.constant 0 : i32
    %c0_i32_0 = arith.constant 0 : i32
    %c0_i32_1 = arith.constant 0 : i32
    return %arg0, %c0_i32, %c0_i32_0 : i32, i32, i32
  }
}

</mosaic_0001>

<bundles_post_ra>
// kernel: tpu_custom_call.1
= control target key start
LH: loop header
LB: loop body
LE: loop exit
PB: predicated region body
PF: predicated region fallthrough
CT: control target
= control target key end

     0   :  { %8 = vsyncpa [#allocation3], 0  ;;  %s702_s0 = inlined_call_operand.vmem [shape: f32[2,16,16], index: 0, kind: input, shape index: {}]   ;;  %s703_s1 = inlined_call_operand.vmem [shape: f32[2,32,16], index: 1, kind: input, shape index: {}]   ;;  %s704_s2 = inlined_call_operand.vmem [shape: f32[2,1,16], index: 2, kind: input, shape index: {}]   ;;  %s705_s3 = inlined_call_operand.hbm [shape: f32[2,8,16], index: 3, kind: output, shape index: {}]  }
   0x1   :  { %10 = vsyncpa [#allocation3 + $0x1], 0  ;;  %s583_s12 = smov 0   ;;  %s585_s13 = smov 0  }
   0x2   :  { %s587_s14 = smov 0   ;;  %s589_s15 = smov 0  }
   0x3   :  { %s591_s16 = smov 0   ;;  %s593_s17 = smov 0  }
   0x4 LB: > { %s404_s18 = sadd.s32 4294967295, %s559_s17   ;;  %s405_s19 = sadd.s32 4294967294, %s559_s17   ;;  %s559_s17 = sphi %s593_s17, %s16_s17   ;;  %s555_s16 = sphi %s591_s16, %s712_s16   ;;  %s551_s15 = sphi %s589_s15, %s711_s15   ;;  %s547_s14 = sphi %s587_s14, %s710_s14   ;;  %s543_s13 = sphi %s585_s13, %s709_s13   ;;  %s539_s12 = sphi %s583_s12, %s708_s12  }
   0x5   : > { %s28_s20 = sadd.s32 1, %s555_s16  ;;  %s119_s21 = sadd.s32 1, %s547_s14 }
   0x6   : > { %p30_p0 = scmp.ge.s32.totalorder %s28_s20, 2  ;;  %p129_p1 = scmp.ne.s32.totalorder %s547_s14, %s543_s13 }
   0x7   : > { %p130_p2 = scmp.eq.s32.totalorder %s404_s18, 1  ;;  %p135_p3 = scmp.ne.s32.totalorder %s543_s13, %s539_s12 }
   0x8   : > { %s714_s20 = smov (%p30_p0, %s28_s20), 0  ;;  %p136_p5 = scmp.eq.s32.totalorder %s405_s19, 1 }
   0x9   : > { %p623_p4 = por %p130_p2, %p129_p1  ;;  %s116_s23 = ssub.s32 %s555_s16, %s714_s20 }
   0xa   : > { %p408_p6 = scmp.ge.s32.totalorder %s559_s17, 1  ;;  %p117_p7 = scmp.eq.s32.totalorder %s116_s23, 0 }
   0xb   : > { %p630_p8 = por %p136_p5, %p135_p3  ;;  %p188_p9 = scmp.lt.s32.totalorder %s559_s17, 3 }
   0xc   : > { %s636_s25 = scalar_select %p117_p7, %s547_s14, %s119_s21  }
   0xd   : > { %p189_p10 = pnand %p408_p6, %p188_p9 }
   0xe   : > { %s226_s26 = sand.u32 (!%p189_p10), 1, %s543_s13   ;;  %p230_p11 = scmp.lt.s32.totalorder (!%p189_p10), %s551_s15, 1 }
   0xf   : > { %192 = sbr.rel (%p189_p10) target bundleno = 68 (0x44), region = 32  ;;  %s409_s27 = sshll.u32 (!%p189_p10), %s226_s26, 3 }
  0x10   : > { %s643_s29 = scalar_lea.vmem (!%p189_p10), [#allocation2], %s409_s27  ;;  %s416_s23 = sshll.u32 (!%p189_p10), %s551_s15, 7 }
  0x11   : > { %s304_s27 = sshll.u32 (!%p189_p10), %s643_s29, 4  ;;  %s302_s4 = scalar_lea.hbm (!%p189_p10), %s705_s3, %s416_s23  ;;  %s305_s27 = int_to_ptr.vmem [resolvable:$true] %s304_s27 }
  0x12   : > { %s291_s5 = scalar_lea.sflag (!%p189_p10), [#allocation3], %s226_s26 }
  0x14   : > { %vm258_vm0 = vcmask 130048   ;;  %s231_s28 = scalar_select %p230_p11, %s551_s15, 1  ;;  %v561_v0 = vmov 0.0  }
  0x15   : > { %259 = vst.msk [vmem:[%s643_s29] sm:$0xff] %vm258_vm0, %v561_v0 }
  0x16   : > { %s419_s30 = sshll.u32 %s231_s28, 4  ;;  %s422_s7 = sshll.u32 %s231_s28, 5 }
  0x17   : > { %s237_s6 = scalar_lea.vmem %s702_s0, %s419_s30  ;;  %s421_s8 = sadd.s32 16, %s422_s7 }
  0x18   : > { %v260_v1 = vld [vmem:[%s237_s6] sm:$0xff]  ;;  %v261_v2 = vld [vmem:[%s237_s6 + $0x8] sm:$0xff]  ;;  %s248_s11 = scalar_lea.vmem %s703_s1, %s421_s8  ;;  %s253_s21 = scalar_lea.vmem %s704_s2, %s231_s28 }
  0x19   : > { %v265_v3 = vadd.f32 1e-16, %v260_v1  ;;  %v266_v4 = vadd.f32 1e-16, %v261_v2  ;;  %v262_v6 = vld [vmem:[%s248_s11] sm:$0xff]  ;;  %v263_v8 = vld [vmem:[%s248_s11 + $0x8] sm:$0xff] }
  0x1a   : > { %v414_v12 = vld [vmem:[%s253_s21] ss:$0 sm:$0xff]  ;;  %s483_s6 = scalar_lea.vmem %s305_s27, 128  ;;  %s562_s7 = smov [#allocation2]  }
  0x1b   : > { %479 = vlog2.f32 %v265_v3  ;;  %p484_p12 = scmp.ne.s32.totalorder %s305_s27, %s483_s6  ;;  %s487_s8 = sshll.u32 %s562_s7, 4  ;;  %s488_s8 = int_to_ptr.vmem [resolvable:$false] %s487_s8 }
  0x1c   : > { %481 = vlog2.f32 %v266_v4  ;;  %v283_v20 = vld [vmem:[%s643_s29] sm:$0xff]  ;;  %s489_s15 = scalar_lea.vmem %s488_s8, 256  ;;  %p490_p1 = scmp.lt.s32.totalorder %s305_s27, %s488_s8 }
  0x1d   : > { %p485_p13 = pnand %p484_p12, %p623_p4  ;;  %p491_p2 = scmp.lt.s32.totalorder %s489_s15, %s483_s6 }
  0x1f   : > { %p486_p0 = pneg %p485_p13  ;;  %p492_p3 = por %p491_p2, %p490_p1 }
  0x21   : > { %p493_p5 = pnand %p492_p3, %p486_p0 }
  0x28   : > { %v480_v5 = vpop.eup %479 }
  0x29   : > { %v482_v7 = vpop.eup %481  ;;  %v268_v9 = vmul.f32 0.6931472, %v480_v5 }
  0x2a   : > { %v270_v10 = vmul.f32 0.6931472, %v482_v7 }
  0x2b   : > { %v271_v11 = vmul.f32 %v268_v9, %v262_v6 }
  0x2c   : > { %v272_v13 = vmul.f32 %v270_v10, %v263_v8 }
  0x2d   : > { %v273_v14 = vsub.f32 %v260_v1, %v271_v11 }
  0x2e   : > { %v274_v15 = vsub.f32 %v261_v2, %v272_v13 }
  0x2f   : > { %v281_v16 = vmul.f32 %v414_v12, %v273_v14 }
  0x30   : > { %v282_v17 = vmul.f32 %v414_v12, %v274_v15 }
  0x31   : > { %v285_v18 = vsel %vm258_vm0, %v281_v16, 0.0 }
  0x32   : > { %v286_v19 = vsel %vm258_vm0, %v282_v17, 0.0 }
  0x33   : > { %v287_v21 = vadd.f32 %v286_v19, %v285_v18 }
  0x35   : > { %v288_v22 = vadd.f32 %v287_v21, %v283_v20 }
  0x37   : > { %289 = vst.msk [vmem:[%s643_s29] sm:$0xff] %vm258_vm0, %v288_v22 }
  0x38   : > { %496 = shalt.err (!%p493_p5)
}
  0x39   : > { %s497_s9 = scalar_lea.hbm %s302_s4, 128  ;;  %s501_s10 = scalar_lea.hbm %s705_s3, 256 }
  0x3a   : > { %p498_p6 = scmp.ne.s32.totalorder %s302_s4, %s497_s9  ;;  %p502_p10 = scmp.lt.s32.totalorder %s302_s4, %s705_s3 }
  0x3b   : > { %p503_p11 = scmp.lt.s32.totalorder %s501_s10, %s497_s9 }
  0x3c   : > { %p499_p7 = pnand %p498_p6, %p623_p4 }
  0x3d   : > { %p504_p12 = por %p503_p11, %p502_p10 }
  0x3e   : > { %p500_p9 = pneg %p499_p7 }
  0x40   : > { %p505_p13 = pnand %p504_p12, %p500_p9 }
  0x42   : > { %508 = shalt.err (!%p505_p13)
}
  0x43   : > { %423 = dma.vmem_to_hbm [thread:$0]  (%p623_p4), %s305_s27, 128, %s302_s4, %s291_s5  }
  0x44 PF: > { %p429_p0 = scmp.ge.s32.totalorder %s559_s17, 2  ;;  %s316_s19 = sand.u32 1, %s539_s12  }
  0x45   : > { %s317_s21 = scalar_lea.sflag [#allocation3], %s316_s19 }
  0x46   : > { %p426_p1 = pnand %p429_p0, %p630_p8 }
  0x48   : > { %p427_p2 = pneg %p426_p1 }
  0x4a   : > { %534 = dma.done.wait (%p427_p2), %s317_s21, 128  }
  0x4b   : > { %536 = vsyncadd (%p427_p2), %s317_s21, 4294967168  ;;  %s16_s17 = sadd.s32 1, %s559_s17   ;;  %s708_s12 = smov %s543_s13 }
  0x4c   : > { %p13_p3 = scmp.ge.s32.totalorder %s16_s17, 4   ;;  %s709_s13 = smov %s547_s14 }
  0x4d   : > { %s710_s14 = smov %s636_s25  ;;  %s711_s15 = smov %s555_s16 }
  0x4e   : > { %s712_s16 = smov %s714_s20  ;;  %15 = sbr.rel (!%p13_p3) target bundleno = 4 (0x4), region = 77 }
  0x53   :  { %322 = vsyncpa [#allocation3], 1 }
  0x54   :  { %324 = vsyncpa [#allocation3 + $0x1], 1 }

</bundles_post_ra>
